<compile_context>
chip_gen: v7x
topology: tpu7x:2x2x1
jax: 0.10.0
libtpu: 0.0.40
codegen_flags: <defaults>
</compile_context>

<pallas_src>
import jax
import jax.numpy as jnp
from jax.experimental import pallas as pl
from jax.experimental.pallas import tpu as pltpu

LANES = 128           # TPU lane width
IN_FEATURES = 2
OUT_FEATURES = 2


def linear_lane_kernel(x_ref, p_ref, o_ref):
    # x_ref: (tb, 128)  interleaved lanes: even = feature 0, odd = feature 1
    # p_ref: (8, 128)   row 0 = c_same, row 1 = c_swap, row 2 = bias (rest pad)
    # o_ref: (tb, 128)  same interleaved layout as x_ref
    v = x_ref[...].astype(jnp.float32)
    c_same = p_ref[0:1, :]
    c_swap = p_ref[1:2, :]
    bias = p_ref[2:3, :]

    # Pairwise lane swap of v (v[2k] <-> v[2k+1]) from two lane rotations plus
    # a parity select.  The mask comes from rolling a lane-index pattern, so
    # the code is correct under either roll direction convention.
    n_l = v.shape[-1]
    lane = jax.lax.broadcasted_iota(jnp.int32, (1, n_l), 1)
    partner = (lane ^ 1).astype(jnp.float32)                    # index of pair partner
    came_from = pltpu.roll(lane.astype(jnp.float32), shift=1, axis=1)
    pick_fwd = came_from == partner                             # (1, 128) bool

    v_fwd = pltpu.roll(v, shift=1, axis=1)
    v_bwd = pltpu.roll(v, shift=n_l - 1, axis=1)
    v_sw = jnp.where(pick_fwd, v_fwd, v_bwd)

    y = v * c_same + v_sw * c_swap + bias
    o_ref[...] = y.astype(o_ref.dtype)


def pack_lane_params(w_t, b):
    """Pack W^T (in, out) and bias into lane-tiled patterns. Call once at init."""
    w_t = jnp.asarray(w_t, jnp.float32)
    b = jnp.asarray(b, jnp.float32).reshape(OUT_FEATURES)
    reps = LANES // 2
    # y0 = x0*w_t[0,0] + x1*w_t[1,0] + b0 ; y1 = x0*w_t[0,1] + x1*w_t[1,1] + b1
    c_same = jnp.tile(jnp.stack([w_t[0, 0], w_t[1, 1]]), reps)   # coeff of v
    c_swap = jnp.tile(jnp.stack([w_t[1, 0], w_t[0, 1]]), reps)   # coeff of swapped v
    bias = jnp.tile(b, reps)
    params = jnp.stack([c_same, c_swap, bias], axis=0)           # (3, 128)
    # Pad to a clean (8, 128) f32 tile.
    return jnp.concatenate(
        [params, jnp.zeros((8 - 3, LANES), jnp.float32)], axis=0)


def linear_pallas(x, lane_params):
    """y = fc(x) for the 2->2 linear; x: (batch, 2), lane_params: (8, 128)."""
    batch, in_features = x.shape
    assert in_features == IN_FEATURES
    n = batch * in_features

    # Free row-major reshape to a lane-dense slab; pad the flat length to a
    # multiple of 8*128 so rows is a multiple of 8 (clean (8,128) tiles).
    flat = x.reshape(-1)
    padded = pl.cdiv(n, 8 * LANES) * (8 * LANES)
    if padded != n:
        flat = jnp.pad(flat, (0, padded - n))
    rows = padded // LANES
    xm = flat.reshape(rows, LANES)

    # Tile selection: large blocks (up to 1024 rows ~ 512 KiB) to amortize the
    # per-grid-step overhead, but >= 2 blocks when possible so the "parallel"
    # batch axis can be sharded across both TensorCores (v7x).
    if rows <= 8:
        tb = rows
    else:
        tb = min(1024, pl.cdiv(rows // 2, 8) * 8)
    grid = (pl.cdiv(rows, tb),)

    ym = pl.pallas_call(
        linear_lane_kernel,
        out_shape=jax.ShapeDtypeStruct((rows, LANES), x.dtype),
        grid=grid,
        in_specs=[
            pl.BlockSpec((tb, LANES), lambda i: (i, 0)),
            pl.BlockSpec((8, LANES), lambda i: (0, 0)),   # resident params
        ],
        out_specs=pl.BlockSpec((tb, LANES), lambda i: (i, 0)),
        compiler_params=pltpu.CompilerParams(
            dimension_semantics=("parallel",),
            vmem_limit_bytes=16 * 1024 * 1024,  # ~2-3 MiB used; portable cap
        ),
    )(xm, lane_params)

    return ym.reshape(-1)[:n].reshape(batch, OUT_FEATURES)


def init_params(key, in_features=IN_FEATURES, out_features=OUT_FEATURES):
    # Deterministic init mimicking nn.Linear's U(-1/sqrt(in), 1/sqrt(in)).
    kw, kb = jax.random.split(key)
    bound = 1.0 / (in_features ** 0.5)
    # PyTorch stores weight as (out, in); we keep the transposed (in, out).
    w = jax.random.uniform(kw, (out_features, in_features),
                           minval=-bound, maxval=bound, dtype=jnp.float32)
    b = jax.random.uniform(kb, (out_features,),
                           minval=-bound, maxval=bound, dtype=jnp.float32)
    return w.T, b


if __name__ == "__main__":
    key = jax.random.PRNGKey(0)
    k_x, k_p = jax.random.split(key)

    batch = 8
    x = jax.random.normal(k_x, (batch, IN_FEATURES), dtype=jnp.float32)
    w_t, b = init_params(k_p)

    # Param packing hoisted out of the per-call path (done once, here).
    lane_params = jax.block_until_ready(pack_lane_params(w_t, b))

    # NOTE: at batch=8 the kernel is pure fixed overhead and a fused XLA linear
    # would be cheaper; the Pallas path is exercised here for validation and
    # pays off once the lane-dense batch tiling sees large batches.
    linear = jax.jit(linear_pallas)
    y = linear(x, lane_params)
    jax.block_until_ready(y)

    # Sanity check against plain-JAX reference.
    y_ref = x @ w_t + b
    assert y.shape == (batch, OUT_FEATURES)
    assert jnp.allclose(y, y_ref, atol=1e-5, rtol=1e-5)

    print("KERNEL_OK")
</pallas_src>

<mosaic_0001>
module attributes {stable_mosaic.version = 11 : i64} {
  func.func @linear_lane_kernel(%arg0: i32, %arg1: memref<8x128xf32, #tpu.memory_space<vmem>>, %arg2: memref<8x128xf32, #tpu.memory_space<vmem>>, %arg3: memref<8x128xf32, #tpu.memory_space<vmem>>) attributes {dimension_semantics = [#tpu.dimension_semantics<parallel>], iteration_bounds = array<i64: 1>, scalar_prefetch = 0 : i64, scratch_operands = 0 : i64, tpu.core_type = #tpu.core_type<tc>, window_params = [{transform_indices = @transform_0, window_bounds = array<i64: 8, 128>}, {pipeline_mode = #tpu.pipeline_mode<synchronous>, transform_indices = @transform_1, window_bounds = array<i64: 8, 128>}, {transform_indices = @transform_2, window_bounds = array<i64: 8, 128>}]} {
    %c0 = arith.constant 0 : index
    %c0_0 = arith.constant 0 : index
    %0 = vector.load %arg1[%c0, %c0_0] : memref<8x128xf32, #tpu.memory_space<vmem>>, vector<8x128xf32>
    %c0_1 = arith.constant 0 : index
    %c0_2 = arith.constant 0 : index
    %1 = vector.load %arg2[%c0_1, %c0_2] : memref<8x128xf32, #tpu.memory_space<vmem>>, vector<1x128xf32>
    %c1 = arith.constant 1 : index
    %c0_3 = arith.constant 0 : index
    %2 = vector.load %arg2[%c1, %c0_3] : memref<8x128xf32, #tpu.memory_space<vmem>>, vector<1x128xf32>
    %c2 = arith.constant 2 : index
    %c0_4 = arith.constant 0 : index
    %3 = vector.load %arg2[%c2, %c0_4] : memref<8x128xf32, #tpu.memory_space<vmem>>, vector<1x128xf32>
    %4 = tpu.iota {dimensions = array<i32: 1>} : vector<1x128xi32>
    %c1_i32 = arith.constant 1 : i32
    %5 = vector.broadcast %c1_i32 : i32 to vector<1x128xi32>
    %6 = arith.xori %4, %5 : vector<1x128xi32>
    %7 = arith.sitofp %6 : vector<1x128xi32> to vector<1x128xf32>
    %8 = arith.sitofp %4 : vector<1x128xi32> to vector<1x128xf32>
    %c1_i32_5 = arith.constant 1 : i32
    %9 = tpu.dynamic_rotate %8 by %c1_i32_5 dim 1 : vector<1x128xf32>, i32 -> vector<1x128xf32>
    %10 = arith.cmpf oeq, %9, %7 : vector<1x128xf32>
    %c1_i32_6 = arith.constant 1 : i32
    %11 = tpu.dynamic_rotate %0 by %c1_i32_6 dim 1 : vector<8x128xf32>, i32 -> vector<8x128xf32>
    %c127_i32 = arith.constant 127 : i32
    %12 = tpu.dynamic_rotate %0 by %c127_i32 dim 1 : vector<8x128xf32>, i32 -> vector<8x128xf32>
    %13 = vector.shape_cast %10 : vector<1x128xi1> to vector<1x128xi1>
    %14 = vector.broadcast %13 : vector<1x128xi1> to vector<8x128xi1>
    %15 = arith.select %14, %11, %12 : vector<8x128xi1>, vector<8x128xf32>
    %16 = vector.broadcast %1 : vector<1x128xf32> to vector<8x128xf32>
    %17 = arith.mulf %0, %16 : vector<8x128xf32>
    %18 = vector.broadcast %2 : vector<1x128xf32> to vector<8x128xf32>
    %19 = arith.mulf %15, %18 : vector<8x128xf32>
    %20 = arith.addf %17, %19 : vector<8x128xf32>
    %21 = vector.broadcast %3 : vector<1x128xf32> to vector<8x128xf32>
    %22 = arith.addf %20, %21 : vector<8x128xf32>
    %c0_7 = arith.constant 0 : index
    %c0_8 = arith.constant 0 : index
    %23 = vector.load %arg3[%c0_7, %c0_8] : memref<8x128xf32, #tpu.memory_space<vmem>>, vector<8x128xf32>
    tpu.vector_store %arg3[%c0_7, %c0_8], %22 {strides = array<i32>} : memref<8x128xf32, #tpu.memory_space<vmem>>, vector<8x128xf32>,
    return
  }
  func.func @transform_0(%arg0: i32) -> (i32, i32) {
    %c0_i32 = arith.constant 0 : i32
    %c0_i32_0 = arith.constant 0 : i32
    return %arg0, %c0_i32 : i32, i32
  }
  func.func @transform_1(%arg0: i32) -> (i32, i32) {
    %c0_i32 = arith.constant 0 : i32
    %c0_i32_0 = arith.constant 0 : i32
    %c0_i32_1 = arith.constant 0 : i32
    return %c0_i32, %c0_i32_0 : i32, i32
  }
  func.func @transform_2(%arg0: i32) -> (i32, i32) {
    %c0_i32 = arith.constant 0 : i32
    %c0_i32_0 = arith.constant 0 : i32
    return %arg0, %c0_i32 : i32, i32
  }
}

</mosaic_0001>

<bundles_post_ra>
// kernel: linear_pallas.1
= control target key start
LH: loop header
LB: loop body
LE: loop exit
PB: predicated region body
PF: predicated region fallthrough
CT: control target
= control target key end

     0   :  { %v15_v0 = vlaneseq  ;;  %s61_s11 = smov 127   ;;  %s62_s12 = smov 1   ;;  %v63_v10 = vmov 0   ;;  %s94_s0 = inlined_call_operand.vmem [shape: f32[8,128], index: 0, kind: input, shape index: {}]   ;;  %s95_s1 = inlined_call_operand.vmem [shape: f32[8,128], index: 1, kind: input, shape index: {}]   ;;  %s96_s2 = inlined_call_operand.vmem [shape: f32[8,128], index: 2, kind: output, shape index: {}]  }
   0x1   :  { %v11_v1 = vld [vmem:[%s94_s0] sm:$0xff] }
   0x2   :  { %v16_v2 = vand.u32 127, %v15_v0  ;;  %25 = vrot.lane.b32.xlu1 %v11_v1, %s61_s11  ;;  %v29_v5 = vshrl.u32 %v15_v0, 7  ;;  %v55_v9 = vld [vmem:[%s95_s1] ss:$0 sm:$0xff]  ;;  %v56_v14 = vld [vmem:[%s95_s1 + $0x1] ss:$0 sm:$0xff] }
   0x3   :  { %v38_v16 = vmul.f32 %v55_v9, %v11_v1  ;;  %v57_v19 = vld [vmem:[%s95_s1 + $0x2] ss:$0 sm:$0xff] }
   0x4   :  { %v19_v3 = vcvt.s32.f32 %v16_v2  ;;  %v17_v4 = vxor.u32 1, %v16_v2  ;;  %v30_v7 = vsub.s32 0, %v29_v5 }
   0x6   :  { %20 = vrot.lane.b32.xlu0 %v19_v3, %s62_s12  ;;  %v18_v6 = vcvt.s32.f32 %v17_v4 }
   0xa   :  { %23 = vrot.lane.b32.xlu0 %v11_v1, %s62_s12 }
  0x74   :  { %v26_v13 = vpop.permute.xlu1 %25 }
  0x78   :  { %v21_v8 = vpop.permute.xlu0 %20 }
  0x79   :  { %vm22_vm0 = vcmp.eq.f32.partialorder %v21_v8, %v18_v6 }
  0x7a   :  { %v27_v11 = vsel %vm22_vm0, 1, %v63_v10 }
  0x7b   :  { %v31_v12 = vrot.slane %v27_v11, %v30_v7 }
  0x7c   :  { %v24_v15 = vpop.permute.xlu0 %23 }
  0x7d   :  { %vm32_vm1 = vcmp.eq.s32.totalorder %v31_v12, 1 }
  0x7e   :  { %v33_v17 = vsel %vm32_vm1, %v24_v15, %v26_v13 }
  0x7f   :  { %v43_v18 = vmul.f32 %v56_v14, %v33_v17 }
  0x81   :  { %v44_v20 = vadd.f32 %v43_v18, %v38_v16 }
  0x83   :  { %v49_v21 = vadd.f32 %v57_v19, %v44_v20 }
  0x85   :  { %50 = vst [vmem:[%s96_s2] sm:$0xff] %v49_v21 }

</bundles_post_ra>
